<compile_context>
chip_gen: v5e
topology: v5e:2x2
jax: 0.10.0
libtpu: 0.0.40
codegen_flags: <defaults>
</compile_context>

<pallas_src>
import functools

import jax
import jax.numpy as jnp
from jax import lax
from jax.experimental import pallas as pl
from jax.experimental.pallas import tpu as pltpu

_LANE = 128


def _round_up(x, m):
    return ((x + m - 1) // m) * m


def _vmem_capacity_bytes():
    """Per-TensorCore VMEM capacity (generation aware); safe fallback."""
    try:
        info = pltpu.get_tpu_info()
        cap = getattr(info, "vmem_capacity_bytes", None)
        if cap:
            return int(cap)
    except Exception:
        pass
    return 128 * 1024 * 1024


def _pick_block_b(batch, num_classes, itemsize, vmem_limit_bytes, sub):
    """Rows per tile, capped only by VMEM bytes, the batch and a >=2-tile rule."""
    # Per-row VMEM bytes while a tile is in flight:
    #   2*itemsize : double-buffered logits input
    #   4          : f32 upcast of the tile
    #   4*4        : ~4 materialized f32 (TB,C) temporaries (z, exp, mask, select)
    #   +1024      : labels tile -- (TB,1) i32 pads to a full (8,128) lane tile,
    #                double-buffered
    per_row = num_classes * (2 * itemsize + 4 + 16) + 1024
    rows = int(vmem_limit_bytes * 0.6) // max(per_row, 1)
    rows = max(sub, (rows // sub) * sub)
    # Guarantee >= 2 grid tiles whenever the batch allows it (v7x megacore +
    # keeps the HBM<->VMEM pipeline busy).
    half = _round_up(max(1, (batch + 1) // 2), sub)
    rows = min(rows, max(sub, half))
    return rows


def _bsm_loss_kernel(labels_ref, logits_ref, logspc_ref, out_ref, *,
                     total_b, block_b, labels_resident, per_sample_out):
    """One batch tile: balanced-softmax CE; masked partial sum or per-sample."""
    i = pl.program_id(0)

    logits = logits_ref[...].astype(jnp.float32)           # (TB, C)
    log_spc = logspc_ref[...]                               # (1, C) f32 (precomputed)
    tb, c = logits.shape

    if labels_resident:
        start = pl.multiple_of(i * block_b, 8)
        labels = labels_ref[pl.ds(start, block_b), :]        # (TB, 1) int32
    else:
        labels = labels_ref[...]                             # (TB, 1) int32

    # Balanced-softmax adjustment.
    z = logits + log_spc                                     # (TB, C)

    # Numerically stable logsumexp over the class (lane) axis.
    m = jnp.max(z, axis=-1, keepdims=True)                   # (TB, 1)
    lse = m + jnp.log(jnp.sum(jnp.exp(z - m), axis=-1, keepdims=True))

    # Gather z[i, label_i] via iota + select (no dynamic gather; no -inf*0 NaN).
    # TODO(synk): out-of-range / negative labels silently give target_z = 0
    # (no ignore_index support), unlike torch.nn.functional.cross_entropy.
    class_ids = lax.broadcasted_iota(jnp.int32, (tb, c), 1)
    target_z = jnp.sum(jnp.where(class_ids == labels, z, 0.0),
                       axis=-1, keepdims=True)               # (TB, 1)

    per_sample = lse - target_z                               # (TB, 1)

    # Mask rows past the true batch (trailing partial logits block contains
    # garbage). Must stay a select -- garbage may be inf/NaN.
    row_ids = i * block_b + lax.broadcasted_iota(jnp.int32, (tb, 1), 0)
    per_sample = jnp.where(row_ids < total_b, per_sample, 0.0)

    if per_sample_out:
        out_ref[...] = per_sample
    else:
        # Lane-dense per-tile partial sum (scalar broadcast across 128 lanes).
        out_ref[...] = jnp.full(out_ref.shape, jnp.sum(per_sample), jnp.float32)


def bsm_loss(logits, labels, sample_per_class, reduction="mean", block_b=None):
    """logits: [B, C] float, labels: [B] int, sample_per_class: [C] int/float."""
    if reduction not in ("none", "mean", "sum"):
        raise ValueError(f"unknown reduction {reduction!r}")

    batch, num_classes = logits.shape
    itemsize = logits.dtype.itemsize
    # Dtype-aware sublane multiple: 8 for 32-bit, 16 for bf16, 32 for 8-bit.
    sub = max(8, 32 // max(itemsize, 1))

    vmem_limit = min(_vmem_capacity_bytes() // 2, 64 * 1024 * 1024)

    if block_b is None:
        block_b = _pick_block_b(batch, num_classes, itemsize, vmem_limit, sub)
    if block_b % sub != 0:
        raise ValueError(f"block_b must be a multiple of {sub}")

    num_tiles = pl.cdiv(batch, block_b)
    batch_pad = num_tiles * block_b

    # Labels are tiny (B*4 bytes): pad so every labels block is full and the
    # resident-slicing path never reads out of bounds.
    labels2d = labels.astype(jnp.int32).reshape(batch, 1)
    if batch_pad != batch:
        labels2d = jnp.pad(labels2d, ((0, batch_pad - batch), (0, 0)))

    # Hoisted once in the wrapper (tiny [C] op) instead of per grid step.
    log_spc = jnp.log(sample_per_class.astype(jnp.float32)).reshape(1, num_classes)

    # Logits are NOT padded (that would cost a full extra HBM pass): Pallas
    # handles the trailing partial block and the kernel masks padded rows.
    # Only if the whole batch is smaller than one block do we pad (tiny array).
    if batch < block_b:
        logits = jnp.pad(logits, ((0, block_b - batch), (0, 0)))

    # Keep labels resident in VMEM when small ((N,1) i32 occupies ~512 B/row);
    # otherwise stream a block per tile.
    labels_resident = batch_pad * 512 <= 2 * 1024 * 1024
    if labels_resident:
        labels_spec = pl.BlockSpec((batch_pad, 1), lambda i: (0, 0))
    else:
        labels_spec = pl.BlockSpec((block_b, 1), lambda i: (i, 0))

    per_sample_out = (reduction == "none")
    if per_sample_out:
        out_shape = jax.ShapeDtypeStruct((batch_pad, 1), jnp.float32)
        out_spec = pl.BlockSpec((block_b, 1), lambda i: (i, 0))
    else:
        out_shape = jax.ShapeDtypeStruct((num_tiles, 1, _LANE), jnp.float32)
        out_spec = pl.BlockSpec((1, 1, _LANE), lambda i: (i, 0, 0))

    # TODO(synk): for vocab-scale C, add a class-axis grid dim with an online
    # (flash-style) logsumexp so VMEM holds TB x TC instead of TB x C.

    kernel = functools.partial(
        _bsm_loss_kernel, total_b=batch, block_b=block_b,
        labels_resident=labels_resident, per_sample_out=per_sample_out)

    result = pl.pallas_call(
        kernel,
        out_shape=out_shape,
        grid=(num_tiles,),
        in_specs=[
            labels_spec,                                               # labels
            pl.BlockSpec((block_b, num_classes), lambda i: (i, 0)),    # logits
            pl.BlockSpec((1, num_classes), lambda i: (0, 0)),          # log(spc)
        ],
        out_specs=out_spec,
        compiler_params=pltpu.CompilerParams(
            dimension_semantics=("parallel",),
            vmem_limit_bytes=vmem_limit,
        ),
        cost_estimate=pl.CostEstimate(
            flops=5 * batch * num_classes,
            transcendentals=batch * num_classes,
            bytes_accessed=(batch * num_classes * itemsize
                            + batch_pad * 4 + num_classes * 4
                            + (batch_pad * 4 if per_sample_out
                               else num_tiles * _LANE * 4)),
        ),
    )(labels2d, logits, log_spc)

    if per_sample_out:
        return result[:batch, 0]
    total = jnp.sum(result[:, 0, 0])
    if reduction == "mean":
        return total / batch
    return total


def bsm_loss_ref(logits, labels, sample_per_class, reduction="mean"):
    """Pure-JAX reference for verification."""
    spc = sample_per_class.astype(jnp.float32)
    z = logits.astype(jnp.float32) + jnp.log(spc)[None, :]
    lse = jax.scipy.special.logsumexp(z, axis=-1)
    target = jnp.take_along_axis(z, labels[:, None], axis=-1)[:, 0]
    per_sample = lse - target
    if reduction == "none":
        return per_sample
    if reduction == "mean":
        return jnp.mean(per_sample)
    return jnp.sum(per_sample)


if __name__ == "__main__":
    key = jax.random.PRNGKey(0)

    # Case 1: module-sized demo (B=8, C=16), single tile, resident labels.
    B, C = 8, 16
    k_logits, k_labels, k2_logits, k2_labels = jax.random.split(key, 4)
    logits = jax.random.normal(k_logits, (B, C), dtype=jnp.float32)
    labels = jax.random.randint(k_labels, (B,), 0, C, dtype=jnp.int32)
    cls_num_list = jnp.arange(1, C + 1, dtype=jnp.int32) * 10

    loss = jax.block_until_ready(bsm_loss(logits, labels, cls_num_list))
    ref = bsm_loss_ref(logits, labels, cls_num_list)
    assert jnp.allclose(loss, ref, atol=1e-5, rtol=1e-5), (loss, ref)

    # Case 2: ragged batch, auto-picked block (>=2 tiles, no logits pad).
    B2, C2 = 37, 16
    logits2 = jax.random.normal(k2_logits, (B2, C2), dtype=jnp.float32)
    labels2 = jax.random.randint(k2_labels, (B2,), 0, C2, dtype=jnp.int32)
    cls_num_list2 = jnp.arange(1, C2 + 1, dtype=jnp.int32) * 7

    loss2 = jax.block_until_ready(bsm_loss(logits2, labels2, cls_num_list2))
    ref2 = bsm_loss_ref(logits2, labels2, cls_num_list2)
    assert jnp.allclose(loss2, ref2, atol=1e-5, rtol=1e-5), (loss2, ref2)

    # Case 3: reduction='sum', explicit block_b (3 tiles, trailing partial block).
    loss3 = jax.block_until_ready(
        bsm_loss(logits2, labels2, cls_num_list2, reduction="sum", block_b=16))
    ref3 = bsm_loss_ref(logits2, labels2, cls_num_list2, reduction="sum")
    assert jnp.allclose(loss3, ref3, atol=1e-4, rtol=1e-5), (loss3, ref3)

    # Case 4: reduction='none' (per-sample output path).
    loss4 = jax.block_until_ready(
        bsm_loss(logits2, labels2, cls_num_list2, reduction="none", block_b=16))
    ref4 = bsm_loss_ref(logits2, labels2, cls_num_list2, reduction="none")
    assert loss4.shape == (B2,)
    assert jnp.allclose(loss4, ref4, atol=1e-5, rtol=1e-5), (loss4, ref4)

    print("KERNEL_OK")
</pallas_src>

<mosaic_0001>
module attributes {stable_mosaic.version = 11 : i64} {
  func.func @_bsm_loss_kernel(%arg0: i32, %arg1: memref<8x1xi32, #tpu.memory_space<vmem>>, %arg2: memref<8x16xf32, #tpu.memory_space<vmem>>, %arg3: memref<1x16xf32, #tpu.memory_space<vmem>>, %arg4: memref<1x1x128xf32, #tpu.memory_space<vmem>>) attributes {dimension_semantics = [#tpu.dimension_semantics<parallel>], iteration_bounds = array<i64: 1>, scalar_prefetch = 0 : i64, scratch_operands = 0 : i64, tpu.core_type = #tpu.core_type<tc>, window_params = [{pipeline_mode = #tpu.pipeline_mode<synchronous>, transform_indices = @transform_0, window_bounds = array<i64: 8, 1>}, {transform_indices = @transform_1, window_bounds = array<i64: 8, 16>}, {pipeline_mode = #tpu.pipeline_mode<synchronous>, transform_indices = @transform_2, window_bounds = array<i64: 1, 16>}, {transform_indices = @transform_3, window_bounds = array<i64: 1, 1, 128>}]} {
    %c0 = arith.constant 0 : index
    %c0_0 = arith.constant 0 : index
    %0 = vector.load %arg2[%c0, %c0_0] : memref<8x16xf32, #tpu.memory_space<vmem>>, vector<8x16xf32>
    %c0_1 = arith.constant 0 : index
    %c0_2 = arith.constant 0 : index
    %1 = vector.load %arg3[%c0_1, %c0_2] : memref<1x16xf32, #tpu.memory_space<vmem>>, vector<1x16xf32>
    %c8_i32 = arith.constant 8 : i32
    %2 = arith.muli %arg0, %c8_i32 : i32
    %3 = tpu.assume_multiple %2, 8 : i32
    %4 = arith.index_cast %3 : i32 to index
    %c0_3 = arith.constant 0 : index
    %5 = vector.load %arg1[%4, %c0_3] : memref<8x1xi32, #tpu.memory_space<vmem>>, vector<8x1xi32>
    %6 = vector.broadcast %1 : vector<1x16xf32> to vector<8x16xf32>
    %7 = arith.addf %0, %6 : vector<8x16xf32>
    %cst = arith.constant dense<0xFF800000> : vector<8xf32>
    %8 = vector.multi_reduction <maximumf>, %7, %cst [1] : vector<8x16xf32> to vector<8xf32>
    %9 = vector.shape_cast %8 : vector<8xf32> to vector<8x1xf32>
    %10 = vector.broadcast %9 : vector<8x1xf32> to vector<8x16xf32>
    %11 = arith.subf %7, %10 : vector<8x16xf32>
    %12 = math.exp %11 : vector<8x16xf32>
    %cst_4 = arith.constant dense<0.000000e+00> : vector<8xf32>
    %13 = vector.multi_reduction <add>, %12, %cst_4 [1] : vector<8x16xf32> to vector<8xf32>
    %14 = vector.shape_cast %13 : vector<8xf32> to vector<8x1xf32>
    %15 = math.log %14 : vector<8x1xf32>
    %16 = arith.addf %9, %15 : vector<8x1xf32>
    %17 = tpu.iota {dimensions = array<i32: 1>} : vector<8x16xi32>
    %18 = vector.broadcast %5 : vector<8x1xi32> to vector<8x16xi32>
    %19 = arith.cmpi eq, %17, %18 : vector<8x16xi32>
    %cst_5 = arith.constant 0.000000e+00 : f32
    %20 = vector.broadcast %cst_5 : f32 to vector<8x16xf32>
    %21 = arith.select %19, %7, %20 : vector<8x16xi1>, vector<8x16xf32>
    %cst_6 = arith.constant dense<0.000000e+00> : vector<8xf32>
    %22 = vector.multi_reduction <add>, %21, %cst_6 [1] : vector<8x16xf32> to vector<8xf32>
    %23 = vector.shape_cast %22 : vector<8xf32> to vector<8x1xf32>
    %24 = arith.subf %16, %23 : vector<8x1xf32>
    %c8_i32_7 = arith.constant 8 : i32
    %25 = arith.muli %arg0, %c8_i32_7 : i32
    %26 = tpu.iota {dimensions = array<i32: 0>} : vector<8x1xi32>
    %27 = vector.broadcast %25 : i32 to vector<8x1xi32>
    %28 = arith.addi %27, %26 : vector<8x1xi32>
    %c8_i32_8 = arith.constant 8 : i32
    %29 = vector.broadcast %c8_i32_8 : i32 to vector<8x1xi32>
    %30 = arith.cmpi slt, %28, %29 : vector<8x1xi32>
    %cst_9 = arith.constant 0.000000e+00 : f32
    %31 = vector.broadcast %cst_9 : f32 to vector<8x1xf32>
    %32 = arith.select %30, %24, %31 : vector<8x1xi1>, vector<8x1xf32>
    %33 = vector.shape_cast %32 : vector<8x1xf32> to vector<1x8x1xf32>
    %cst_10 = arith.constant dense<0.000000e+00> : vector<1xf32>
    %34 = vector.multi_reduction <add>, %33, %cst_10 [1, 2] : vector<1x8x1xf32> to vector<1xf32>
    %35 = vector.shape_cast %34 : vector<1xf32> to vector<1x1x1xf32>
    %36 = vector.extract %35[0, 0, 0] : f32 from vector<1x1x1xf32>
    %37 = vector.broadcast %36 : f32 to vector<1x1x128xf32>
    %c0_11 = arith.constant 0 : index
    %c0_12 = arith.constant 0 : index
    %c0_13 = arith.constant 0 : index
    %38 = vector.load %arg4[%c0_11, %c0_12, %c0_13] : memref<1x1x128xf32, #tpu.memory_space<vmem>>, vector<1x1x128xf32>
    tpu.vector_store %arg4[%c0_11, %c0_12, %c0_13], %37 {strides = array<i32>} : memref<1x1x128xf32, #tpu.memory_space<vmem>>, vector<1x1x128xf32>,
    return
  }
  func.func @transform_0(%arg0: i32) -> (i32, i32) {
    %c0_i32 = arith.constant 0 : i32
    %c0_i32_0 = arith.constant 0 : i32
    %c0_i32_1 = arith.constant 0 : i32
    return %c0_i32, %c0_i32_0 : i32, i32
  }
  func.func @transform_1(%arg0: i32) -> (i32, i32) {
    %c0_i32 = arith.constant 0 : i32
    %c0_i32_0 = arith.constant 0 : i32
    return %arg0, %c0_i32 : i32, i32
  }
  func.func @transform_2(%arg0: i32) -> (i32, i32) {
    %c0_i32 = arith.constant 0 : i32
    %c0_i32_0 = arith.constant 0 : i32
    %c0_i32_1 = arith.constant 0 : i32
    return %c0_i32, %c0_i32_0 : i32, i32
  }
  func.func @transform_3(%arg0: i32) -> (i32, i32, i32) {
    %c0_i32 = arith.constant 0 : i32
    %c0_i32_0 = arith.constant 0 : i32
    %c0_i32_1 = arith.constant 0 : i32
    return %arg0, %c0_i32, %c0_i32_0 : i32, i32, i32
  }
}

</mosaic_0001>

<bundles_post_ra>
// kernel: tpu_custom_call.1
= control target key start
LH: loop header
LB: loop body
LE: loop exit
PB: predicated region body
PF: predicated region fallthrough
CT: control target
= control target key end

     0   :  { %vm24_vm0 = vcmask 130048   ;;  %s156_s0 = inlined_call_operand.vmem [shape: s32[8,1], index: 0, kind: input, shape index: {}]   ;;  %s157_s1 = inlined_call_operand.vmem [shape: f32[8,16], index: 1, kind: input, shape index: {}]   ;;  %s158_s2 = inlined_call_operand.vmem [shape: f32[1,16], index: 2, kind: input, shape index: {}]   ;;  %s159_s3 = inlined_call_operand.hbm [shape: f32[1,1,128], index: 3, kind: output, shape index: {}]  }
   0x1   :  { %v15_v0 = vld [vmem:[%s157_s1] sm:$0xff] }
   0x2   :  { %v88_v1 = vld [vmem:[%s158_s2] ss:$0 sm:$0xff] }
   0x3   :  { %8 = vsyncpa [#allocation3], 0  ;;  %v23_v2 = vadd.f32 %v88_v1, %v15_v0  ;;  %v119_v3 = vmov 0   ;;  %v19_v5 = vld [vmem:[%s156_s0] sm:$0xff]  ;;  %v37_v11 = vlaneseq  ;;  %vm54_vm2 = vcmask 7168   ;;  %s120_s0 = smov [#allocation2]  }
   0x4   :  { %87 = vset.pattern.permute.xlu0 %v119_v3  ;;  %s72_s1 = sshll.u32 %s120_s0, 4  ;;  %s74_s19 = sshll.u32 %s159_s3, 4  ;;  %s73_s1 = int_to_ptr.vmem [resolvable:$true] %s72_s1  ;;  %s75_s19 = int_to_ptr.hbm [resolvable:$true] %s74_s19 }
   0x5   :  { %v25_v4 = vsel %vm24_vm0, %v23_v2, -inf  ;;  %v38_v12 = vand.u32 127, %v37_v11 }
   0x6   :  { %26 = vmax.xlane.f32.xlu0 %v25_v4 }
  0x1a   :  { %40 = vperm.xlu0 %87, %v19_v5  }
  0x79   :  { %v27_v6 = vpop.xlane.xlu0 %26 }
  0x7a   :  { %v28_v7 = vsub.f32 %v23_v2, %v27_v6 }
  0x7c   :  { %v29_v8 = vmul.f32 1.442695, %v28_v7 }
  0x7e   :  { %89 = vpow2.f32 %v29_v8 }
  0x84   :  { %v90_v9 = vpop.eup %89 }
  0x85   :  { %v31_v10 = vsel %vm24_vm0, %v90_v9, 0.0 }
  0x86   :  { %32 = vadd.xlane.f32.xlu1 %v31_v10 }
  0x8c   :  { %v41_v13 = vpop.permute.xlu0 %40 }
  0x8d   :  { %vm42_vm1 = vcmp.eq.s32.totalorder %v38_v12, %v41_v13 }
  0x8e   :  { %v43_v14 = vsel %vm42_vm1, %v23_v2, 0.0 }
  0x8f   :  { %v44_v15 = vsel %vm24_vm0, %v43_v14, 0.0 }
  0x90   :  { %45 = vadd.xlane.f32.xlu1 %v44_v15 }
  0xf9   :  { %v33_v16 = vpop.xlane.xlu1 %32 }
  0xfa   :  { %91 = vlog2.f32 %v33_v16 }
 0x100   :  { %v92_v17 = vpop.eup %91 }
 0x101   :  { %v35_v18 = vmul.f32 0.6931472, %v92_v17 }
 0x103   :  { %v36_v19 = vadd.f32 %v35_v18, %v27_v6  ;;  %v46_v20 = vpop.xlane.xlu1 %45 }
 0x105   :  { %v47_v21 = vsub.f32 %v36_v19, %v46_v20 }
 0x107   :  { %v55_v22 = vsel %vm54_vm2, %v47_v21, 0.0 }
 0x108   :  { %56 = vadd.xlane.f32.xlu2 %v55_v22 }
 0x17b   :  { %v57_v23 = vpop.xlane.xlu2 %56 }
 0x17c   :  { %v58_v24 = vrot.slane %v57_v23, 4 }
 0x17e   :  { %v59_v25 = vadd.f32 %v58_v24, %v57_v23 }
 0x180   :  { %v60_v26 = vrot.slane %v59_v25, 2 }
 0x182   :  { %v61_v27 = vadd.f32 %v60_v26, %v59_v25 }
 0x184   :  { %v62_v28 = vrot.slane %v61_v27, 1 }
 0x186   :  { %v63_v29 = vadd.f32 %v62_v28, %v61_v27 }
 0x188   :  { %83 = vpush %v63_v29 }
 0x1b9   :  { %s84_s20 = spop %83 }
 0x1ba   :  { %v65_v30 = vstv %s84_s20 }
 0x1bb   :  { %66 = vst [vmem:[#allocation2] sm:$0x1] %v65_v30 }
 0x1bc   :  { %77 = dma.vmem_to_hbm [thread:$0]  %s73_s1, 16, %s75_s19, [#allocation3]  }
 0x1bd   :  { %117 = dma.done.wait [#allocation3], 16  }
 0x1be   :  { %118 = vsyncadd [#allocation3], 4294967280 }
 0x1bf   :  { %82 = vsyncpa [#allocation3], 1 }

</bundles_post_ra>
